<compile_context>
chip_gen: v7x
topology: tpu7x:2x2x1
jax: 0.10.0
libtpu: 0.0.40
codegen_flags: <defaults>
</compile_context>

<pallas_src>
import functools

import jax
import jax.numpy as jnp
from jax.experimental import pallas as pl
from jax.experimental.pallas import tpu as pltpu


def _round_up(x, m):
    return ((x + m - 1) // m) * m


def _dist_value_head_kernel(x_ref,
                            w_phi_ref, b_phi_ref,
                            w_h_ref, b_h_ref,
                            w_og_ref, b_ow_ref,
                            o_ref, h_scratch,
                            *, lane_pack):
    """Fused phi (Linear+ReLU) -> hidden (Linear+ReLU) -> output Linear.

    The output Linear is evaluated per row-group j (tile rows j, j+lane_pack, ...)
    against a lane-shifted block-diagonal copy of the output weight so that
      o_ref[i, j*D:(j+1)*D] == logits[i*lane_pack + j, :]
    i.e. the output block is the row-major repack of the (tile_b, D) logits into a
    lane-dense (tile_b//lane_pack, D*lane_pack) slab.
    """
    # phi body: Linear + ReLU (bf16 MXU inputs, f32 accumulate).
    h = jnp.dot(x_ref[...], w_phi_ref[...], preferred_element_type=jnp.float32)
    h = jnp.maximum(h + b_phi_ref[...], 0.0)

    # head hidden layer: Linear + ReLU (hidden_activation='relu').
    h = jnp.dot(h.astype(w_h_ref.dtype), w_h_ref[...],
                preferred_element_type=jnp.float32)
    h = jnp.maximum(h + b_h_ref[...], 0.0)

    if lane_pack == 1:
        # No lane packing needed (out_flat already lane-dense): single matmul + store.
        logits = jnp.dot(h.astype(w_og_ref.dtype), w_og_ref[0],
                         preferred_element_type=jnp.float32)
        o_ref[...] = (logits + b_ow_ref[...]).astype(o_ref.dtype)
        return

    # Stage hidden activations in VMEM so row-groups can be read back with a
    # sublane stride (plain f32 strided ref loads, no reshape/transpose).
    h_scratch[...] = h

    tile_b = h_scratch.shape[0]
    rows = tile_b // lane_pack
    acc = jnp.zeros((rows, o_ref.shape[1]), jnp.float32)
    for j in range(lane_pack):                                   # static unroll
        hj = h_scratch[pl.ds(j, rows, stride=lane_pack), :]      # rows j, j+lp, ...
        acc = acc + jnp.dot(hj.astype(w_og_ref.dtype), w_og_ref[j],
                            preferred_element_type=jnp.float32)

    # head output layer bias, output_activation='none'; dense 128-lane store.
    o_ref[...] = (acc + b_ow_ref[...]).astype(o_ref.dtype)


def pack_params(params):
    """One-time packing of the module parameters for the fused kernel.

    * weights cast to bf16 for the MXU, biases kept f32 (added on f32 accumulators)
    * output weight replicated block-diagonally so the kernel's output store is a
      full 128-lane-wide store (lane packing of the batch dimension).
    """
    bf16 = jnp.bfloat16
    hid_dim, out_flat = params["w_o"].shape

    if out_flat < 128 and 128 % out_flat == 0:
        lane_pack = min(128 // out_flat, 16)
    else:
        lane_pack = 1
    out_wide = out_flat * lane_pack

    # w_og[j, :, j*D:(j+1)*D] = w_o, zeros elsewhere (single einsum, no scatter loop).
    eye = jnp.eye(lane_pack, dtype=jnp.float32)
    w_og = jnp.einsum("jk,hd->jhkd", eye, params["w_o"].astype(jnp.float32))
    w_og = w_og.reshape(lane_pack, hid_dim, out_wide).astype(bf16)

    return {
        "w_phi": params["w_phi"].astype(bf16),
        "b_phi": params["b_phi"].astype(jnp.float32),
        "w_h": params["w_h"].astype(bf16),
        "b_h": params["b_h"].astype(jnp.float32),
        "w_og": w_og,
        "b_ow": jnp.tile(params["b_o"].astype(jnp.float32), (1, lane_pack)),
    }


def _choose_tiling(batch, lane_pack, max_tile_b):
    """Balanced batch tiling: ceil-split the batch so padding waste stays small."""
    if batch <= max_tile_b:
        tile_b = max(_round_up(batch, lane_pack), lane_pack)
    else:
        quantum = 8 * lane_pack                     # sublane alignment of packed rows
        n_tiles = pl.cdiv(batch, max_tile_b)
        tile_b = _round_up(pl.cdiv(batch, n_tiles), quantum)
    pad_batch = _round_up(batch, tile_b)
    return tile_b, pad_batch


@functools.partial(jax.jit, static_argnames=("output_dim", "support_dim", "max_tile_b"))
def distribution_value_head(x, packed, output_dim, support_dim, max_tile_b=512):
    """Runs the fused head kernel and applies the distributional reshape."""
    batch, in_dim = x.shape
    phi_dim = packed["w_phi"].shape[1]
    hid_dim = packed["w_h"].shape[1]
    lane_pack = packed["w_og"].shape[0]             # static under jit
    out_wide = packed["w_og"].shape[2]
    out_flat = out_wide // lane_pack

    tile_b, pad_batch = _choose_tiling(batch, lane_pack, max_tile_b)
    if pad_batch != batch:
        x = jnp.pad(x, ((0, pad_batch - batch), (0, 0)))
    grid = (pad_batch // tile_b,)

    x_bf = x.astype(jnp.bfloat16)

    const2 = lambda a: pl.BlockSpec(a.shape, lambda i: (0, 0))
    const3 = lambda a: pl.BlockSpec(a.shape, lambda i: (0, 0, 0))

    flops = 2 * pad_batch * (in_dim * phi_dim + phi_dim * hid_dim + hid_dim * out_flat)
    bytes_accessed = (x_bf.size * 2
                      + (packed["w_phi"].size + packed["w_h"].size + packed["w_og"].size) * 2
                      + (packed["b_phi"].size + packed["b_h"].size + packed["b_ow"].size) * 4
                      + pad_batch * out_flat * 4)
    cost = pl.CostEstimate(flops=int(flops), transcendentals=0,
                           bytes_accessed=int(bytes_accessed))

    out_packed = pl.pallas_call(
        functools.partial(_dist_value_head_kernel, lane_pack=lane_pack),
        out_shape=jax.ShapeDtypeStruct((pad_batch // lane_pack, out_wide), jnp.float32),
        grid=grid,
        in_specs=[
            pl.BlockSpec((tile_b, in_dim), lambda i: (i, 0)),   # x: tiled over batch
            const2(packed["w_phi"]), const2(packed["b_phi"]),   # weights: VMEM-resident
            const2(packed["w_h"]), const2(packed["b_h"]),
            const3(packed["w_og"]), const2(packed["b_ow"]),
        ],
        out_specs=pl.BlockSpec((tile_b // lane_pack, out_wide), lambda i: (i, 0)),
        scratch_shapes=[pltpu.VMEM((tile_b, hid_dim), jnp.float32)],
        compiler_params=pltpu.CompilerParams(dimension_semantics=("parallel",)),
        cost_estimate=cost,
    )(x_bf, packed["w_phi"], packed["b_phi"], packed["w_h"], packed["b_h"],
      packed["w_og"], packed["b_ow"])

    # (pad_batch//lane_pack, out_flat*lane_pack) is row-major identical to
    # (pad_batch, out_flat): undo padding and apply the distributional view.
    logits = out_packed.reshape(pad_batch, out_flat)[:batch]
    return logits.reshape(-1, output_dim, support_dim)


def init_params(key, in_dim, phi_dim, hid_dim, out_flat_dim):
    """Deterministic synthetic parameters (uniform init for the output layer,
    fan-in uniform for the rest, matching the module's init structure)."""
    ks = jax.random.split(key, 6)

    def u(k, shape, scale):
        return jax.random.uniform(k, shape, jnp.float32, -scale, scale)

    return {
        "w_phi": u(ks[0], (in_dim, phi_dim), 1.0 / jnp.sqrt(in_dim)),
        "b_phi": u(ks[1], (1, phi_dim), 1.0 / jnp.sqrt(in_dim)),
        "w_h": u(ks[2], (phi_dim, hid_dim), 1.0 / jnp.sqrt(phi_dim)),
        "b_h": u(ks[3], (1, hid_dim), 1.0 / jnp.sqrt(phi_dim)),
        # ops.uniform_init on the final layer -> small uniform(-3e-3, 3e-3)
        "w_o": u(ks[4], (hid_dim, out_flat_dim), 3e-3),
        "b_o": u(ks[5], (1, out_flat_dim), 3e-3),
    }


if __name__ == "__main__":
    # Small demo shapes consistent with the module's forward.  (At these sizes
    # pallas_call dispatch overhead dominates; the tiling only pays off at
    # production batch sizes >= 512, which the wrapper handles automatically.)
    BATCH = 8          # batch of states
    IN_DIM = 32        # raw observation features fed to phi
    PHI_DIM = 32       # phi.output_dim
    HID_DIM = 32       # hidden_dim = (32,)
    OUTPUT_DIM = 4     # e.g. number of actions / value heads
    SUPPORT_DIM = 8    # distributional support atoms

    key = jax.random.PRNGKey(0)
    k_x, k_p = jax.random.split(key)
    x = jax.random.normal(k_x, (BATCH, IN_DIM), jnp.float32)
    params = init_params(k_p, IN_DIM, PHI_DIM, HID_DIM, OUTPUT_DIM * SUPPORT_DIM)

    packed = pack_params(params)                    # one-time weight packing
    out = distribution_value_head(x, packed, OUTPUT_DIM, SUPPORT_DIM)
    out = jax.block_until_ready(out)

    # Pure-JAX reference mirroring the kernel's numerics (bf16 MXU inputs,
    # f32 accumulation), for sanity.
    def ref(x, p):
        bf = jnp.bfloat16
        h = jnp.dot(x.astype(bf), p["w_phi"].astype(bf),
                    preferred_element_type=jnp.float32)
        h = jnp.maximum(h + p["b_phi"], 0.0)
        h = jnp.dot(h.astype(bf), p["w_h"].astype(bf),
                    preferred_element_type=jnp.float32)
        h = jnp.maximum(h + p["b_h"], 0.0)
        o = jnp.dot(h.astype(bf), p["w_o"].astype(bf),
                    preferred_element_type=jnp.float32)
        o = o + p["b_o"]
        return o.reshape(-1, OUTPUT_DIM, SUPPORT_DIM)

    expected = ref(x, params)
    assert out.shape == (BATCH, OUTPUT_DIM, SUPPORT_DIM), out.shape
    assert jnp.allclose(out, expected, atol=1e-4, rtol=1e-4)
    print("KERNEL_OK")

    # TODO(synk): noisy-linear variants (noise_type='factorized'/'independent',
    # sample_noise/reset_noise) are not modeled; this kernel covers noise_type='none'.
</pallas_src>

<mosaic_0001>
module attributes {stable_mosaic.version = 11 : i64} {
  func.func @_dist_value_head_kernel(%arg0: i32, %arg1: memref<8x32xbf16, #tpu.memory_space<vmem>>, %arg2: memref<32x32xbf16, #tpu.memory_space<vmem>>, %arg3: memref<1x32xf32, #tpu.memory_space<vmem>>, %arg4: memref<32x32xbf16, #tpu.memory_space<vmem>>, %arg5: memref<1x32xf32, #tpu.memory_space<vmem>>, %arg6: memref<4x32x128xbf16, #tpu.memory_space<vmem>>, %arg7: memref<1x128xf32, #tpu.memory_space<vmem>>, %arg8: memref<2x128xf32, #tpu.memory_space<vmem>>, %arg9: memref<8x32xf32, #tpu.memory_space<vmem>>) attributes {dimension_semantics = [#tpu.dimension_semantics<parallel>], iteration_bounds = array<i64: 1>, scalar_prefetch = 0 : i64, scratch_operands = 1 : i64, tpu.core_type = #tpu.core_type<tc>, window_params = [{transform_indices = @transform_0, window_bounds = array<i64: 8, 32>}, {pipeline_mode = #tpu.pipeline_mode<synchronous>, transform_indices = @transform_1, window_bounds = array<i64: 32, 32>}, {pipeline_mode = #tpu.pipeline_mode<synchronous>, transform_indices = @transform_2, window_bounds = array<i64: 1, 32>}, {pipeline_mode = #tpu.pipeline_mode<synchronous>, transform_indices = @transform_3, window_bounds = array<i64: 32, 32>}, {pipeline_mode = #tpu.pipeline_mode<synchronous>, transform_indices = @transform_4, window_bounds = array<i64: 1, 32>}, {pipeline_mode = #tpu.pipeline_mode<synchronous>, transform_indices = @transform_5, window_bounds = array<i64: 4, 32, 128>}, {pipeline_mode = #tpu.pipeline_mode<synchronous>, transform_indices = @transform_6, window_bounds = array<i64: 1, 128>}, {transform_indices = @transform_7, window_bounds = array<i64: 2, 128>}]} {
    %c0 = arith.constant 0 : index
    %c0_0 = arith.constant 0 : index
    %0 = vector.load %arg1[%c0, %c0_0] : memref<8x32xbf16, #tpu.memory_space<vmem>>, vector<8x32xbf16>
    %c0_1 = arith.constant 0 : index
    %c0_2 = arith.constant 0 : index
    %1 = vector.load %arg2[%c0_1, %c0_2] : memref<32x32xbf16, #tpu.memory_space<vmem>>, vector<32x32xbf16>
    %cst = arith.constant dense<0.000000e+00> : vector<8x32xf32>
    %2 = tpu.matmul %0, %1, %cst {dimension_numbers = #tpu.dot_dimension_numbers<[1], [0], [0], [1], [0, 0, 1, 1], [], []>} : vector<8x32xbf16>, vector<32x32xbf16>, vector<8x32xf32> -> vector<8x32xf32>
    %c0_3 = arith.constant 0 : index
    %c0_4 = arith.constant 0 : index
    %3 = vector.load %arg3[%c0_3, %c0_4] : memref<1x32xf32, #tpu.memory_space<vmem>>, vector<1x32xf32>
    %4 = vector.broadcast %3 : vector<1x32xf32> to vector<8x32xf32>
    %5 = arith.addf %2, %4 : vector<8x32xf32>
    %cst_5 = arith.constant 0.000000e+00 : f32
    %6 = vector.broadcast %cst_5 : f32 to vector<8x32xf32>
    %7 = arith.maximumf %5, %6 : vector<8x32xf32>
    %8 = arith.truncf %7 : vector<8x32xf32> to vector<8x32xbf16>
    %c0_6 = arith.constant 0 : index
    %c0_7 = arith.constant 0 : index
    %9 = vector.load %arg4[%c0_6, %c0_7] : memref<32x32xbf16, #tpu.memory_space<vmem>>, vector<32x32xbf16>
    %cst_8 = arith.constant dense<0.000000e+00> : vector<8x32xf32>
    %10 = tpu.matmul %8, %9, %cst_8 {dimension_numbers = #tpu.dot_dimension_numbers<[1], [0], [0], [1], [0, 0, 1, 1], [], []>} : vector<8x32xbf16>, vector<32x32xbf16>, vector<8x32xf32> -> vector<8x32xf32>
    %c0_9 = arith.constant 0 : index
    %c0_10 = arith.constant 0 : index
    %11 = vector.load %arg5[%c0_9, %c0_10] : memref<1x32xf32, #tpu.memory_space<vmem>>, vector<1x32xf32>
    %12 = vector.broadcast %11 : vector<1x32xf32> to vector<8x32xf32>
    %13 = arith.addf %10, %12 : vector<8x32xf32>
    %cst_11 = arith.constant 0.000000e+00 : f32
    %14 = vector.broadcast %cst_11 : f32 to vector<8x32xf32>
    %15 = arith.maximumf %13, %14 : vector<8x32xf32>
    %c0_12 = arith.constant 0 : index
    %c0_13 = arith.constant 0 : index
    %16 = vector.load %arg9[%c0_12, %c0_13] : memref<8x32xf32, #tpu.memory_space<vmem>>, vector<8x32xf32>
    tpu.vector_store %arg9[%c0_12, %c0_13], %15 {strides = array<i32>} : memref<8x32xf32, #tpu.memory_space<vmem>>, vector<8x32xf32>,
    %cst_14 = arith.constant 0.000000e+00 : f32
    %17 = vector.broadcast %cst_14 : f32 to vector<2x128xf32>
    %c0_15 = arith.constant 0 : index
    %c0_16 = arith.constant 0 : index
    %18 = tpu.strided_load %arg9[%c0_15, %c0_16] {strides = array<i32: 4, 1>} : memref<8x32xf32, #tpu.memory_space<vmem>>, vector<2x32xf32>
    %19 = arith.truncf %18 : vector<2x32xf32> to vector<2x32xbf16>
    %c0_17 = arith.constant 0 : index
    %c0_18 = arith.constant 0 : index
    %c0_19 = arith.constant 0 : index
    %20 = vector.load %arg6[%c0_17, %c0_18, %c0_19] : memref<4x32x128xbf16, #tpu.memory_space<vmem>>, vector<1x32x128xbf16>
    %21 = vector.shape_cast %20 : vector<1x32x128xbf16> to vector<32x128xbf16>
    %cst_20 = arith.constant dense<0.000000e+00> : vector<2x128xf32>
    %22 = tpu.matmul %19, %21, %cst_20 {dimension_numbers = #tpu.dot_dimension_numbers<[1], [0], [0], [1], [0, 0, 1, 1], [], []>} : vector<2x32xbf16>, vector<32x128xbf16>, vector<2x128xf32> -> vector<2x128xf32>
    %23 = arith.addf %17, %22 : vector<2x128xf32>
    %c1 = arith.constant 1 : index
    %c0_21 = arith.constant 0 : index
    %24 = tpu.strided_load %arg9[%c1, %c0_21] {strides = array<i32: 4, 1>} : memref<8x32xf32, #tpu.memory_space<vmem>>, vector<2x32xf32>
    %25 = arith.truncf %24 : vector<2x32xf32> to vector<2x32xbf16>
    %c1_22 = arith.constant 1 : index
    %c0_23 = arith.constant 0 : index
    %c0_24 = arith.constant 0 : index
    %26 = vector.load %arg6[%c1_22, %c0_23, %c0_24] : memref<4x32x128xbf16, #tpu.memory_space<vmem>>, vector<1x32x128xbf16>
    %27 = vector.shape_cast %26 : vector<1x32x128xbf16> to vector<32x128xbf16>
    %cst_25 = arith.constant dense<0.000000e+00> : vector<2x128xf32>
    %28 = tpu.matmul %25, %27, %cst_25 {dimension_numbers = #tpu.dot_dimension_numbers<[1], [0], [0], [1], [0, 0, 1, 1], [], []>} : vector<2x32xbf16>, vector<32x128xbf16>, vector<2x128xf32> -> vector<2x128xf32>
    %29 = arith.addf %23, %28 : vector<2x128xf32>
    %c2 = arith.constant 2 : index
    %c0_26 = arith.constant 0 : index
    %30 = tpu.strided_load %arg9[%c2, %c0_26] {strides = array<i32: 4, 1>} : memref<8x32xf32, #tpu.memory_space<vmem>>, vector<2x32xf32>
    %31 = arith.truncf %30 : vector<2x32xf32> to vector<2x32xbf16>
    %c2_27 = arith.constant 2 : index
    %c0_28 = arith.constant 0 : index
    %c0_29 = arith.constant 0 : index
    %32 = vector.load %arg6[%c2_27, %c0_28, %c0_29] : memref<4x32x128xbf16, #tpu.memory_space<vmem>>, vector<1x32x128xbf16>
    %33 = vector.shape_cast %32 : vector<1x32x128xbf16> to vector<32x128xbf16>
    %cst_30 = arith.constant dense<0.000000e+00> : vector<2x128xf32>
    %34 = tpu.matmul %31, %33, %cst_30 {dimension_numbers = #tpu.dot_dimension_numbers<[1], [0], [0], [1], [0, 0, 1, 1], [], []>} : vector<2x32xbf16>, vector<32x128xbf16>, vector<2x128xf32> -> vector<2x128xf32>
    %35 = arith.addf %29, %34 : vector<2x128xf32>
    %c3 = arith.constant 3 : index
    %c0_31 = arith.constant 0 : index
    %36 = tpu.strided_load %arg9[%c3, %c0_31] {strides = array<i32: 4, 1>} : memref<8x32xf32, #tpu.memory_space<vmem>>, vector<2x32xf32>
    %37 = arith.truncf %36 : vector<2x32xf32> to vector<2x32xbf16>
    %c3_32 = arith.constant 3 : index
    %c0_33 = arith.constant 0 : index
    %c0_34 = arith.constant 0 : index
    %38 = vector.load %arg6[%c3_32, %c0_33, %c0_34] : memref<4x32x128xbf16, #tpu.memory_space<vmem>>, vector<1x32x128xbf16>
    %39 = vector.shape_cast %38 : vector<1x32x128xbf16> to vector<32x128xbf16>
    %cst_35 = arith.constant dense<0.000000e+00> : vector<2x128xf32>
    %40 = tpu.matmul %37, %39, %cst_35 {dimension_numbers = #tpu.dot_dimension_numbers<[1], [0], [0], [1], [0, 0, 1, 1], [], []>} : vector<2x32xbf16>, vector<32x128xbf16>, vector<2x128xf32> -> vector<2x128xf32>
    %41 = arith.addf %35, %40 : vector<2x128xf32>
    %c0_36 = arith.constant 0 : index
    %c0_37 = arith.constant 0 : index
    %42 = vector.load %arg7[%c0_36, %c0_37] : memref<1x128xf32, #tpu.memory_space<vmem>>, vector<1x128xf32>
    %43 = vector.broadcast %42 : vector<1x128xf32> to vector<2x128xf32>
    %44 = arith.addf %41, %43 : vector<2x128xf32>
    %c0_38 = arith.constant 0 : index
    %c0_39 = arith.constant 0 : index
    %45 = vector.load %arg8[%c0_38, %c0_39] : memref<2x128xf32, #tpu.memory_space<vmem>>, vector<2x128xf32>
    tpu.vector_store %arg8[%c0_38, %c0_39], %44 {strides = array<i32>} : memref<2x128xf32, #tpu.memory_space<vmem>>, vector<2x128xf32>,
    return
  }
  func.func @transform_0(%arg0: i32) -> (i32, i32) {
    %c0_i32 = arith.constant 0 : i32
    %c0_i32_0 = arith.constant 0 : i32
    return %arg0, %c0_i32 : i32, i32
  }
  func.func @transform_1(%arg0: i32) -> (i32, i32) {
    %c0_i32 = arith.constant 0 : i32
    %c0_i32_0 = arith.constant 0 : i32
    %c0_i32_1 = arith.constant 0 : i32
    return %c0_i32, %c0_i32_0 : i32, i32
  }
  func.func @transform_2(%arg0: i32) -> (i32, i32) {
    %c0_i32 = arith.constant 0 : i32
    %c0_i32_0 = arith.constant 0 : i32
    %c0_i32_1 = arith.constant 0 : i32
    return %c0_i32, %c0_i32_0 : i32, i32
  }
  func.func @transform_3(%arg0: i32) -> (i32, i32) {
    %c0_i32 = arith.constant 0 : i32
    %c0_i32_0 = arith.constant 0 : i32
    %c0_i32_1 = arith.constant 0 : i32
    return %c0_i32, %c0_i32_0 : i32, i32
  }
  func.func @transform_4(%arg0: i32) -> (i32, i32) {
    %c0_i32 = arith.constant 0 : i32
    %c0_i32_0 = arith.constant 0 : i32
    %c0_i32_1 = arith.constant 0 : i32
    return %c0_i32, %c0_i32_0 : i32, i32
  }
  func.func @transform_5(%arg0: i32) -> (i32, i32, i32) {
    %c0_i32 = arith.constant 0 : i32
    %c0_i32_0 = arith.constant 0 : i32
    %c0_i32_1 = arith.constant 0 : i32
    %c0_i32_2 = arith.constant 0 : i32
    return %c0_i32, %c0_i32_0, %c0_i32_1 : i32, i32, i32
  }
  func.func @transform_6(%arg0: i32) -> (i32, i32) {
    %c0_i32 = arith.constant 0 : i32
    %c0_i32_0 = arith.constant 0 : i32
    %c0_i32_1 = arith.constant 0 : i32
    return %c0_i32, %c0_i32_0 : i32, i32
  }
  func.func @transform_7(%arg0: i32) -> (i32, i32) {
    %c0_i32 = arith.constant 0 : i32
    %c0_i32_0 = arith.constant 0 : i32
    return %arg0, %c0_i32 : i32, i32
  }
}

</mosaic_0001>

<bundles_post_ra>
// kernel: distribution_value_head.1
= control target key start
LH: loop header
LB: loop body
LE: loop exit
PB: predicated region body
PF: predicated region fallthrough
CT: control target
= control target key end

     0   :  { %12 = vsyncpa [#allocation4], 0  ;;  %s735_s0 = inlined_call_operand.vmem [shape: bf16[8,32], index: 0, kind: input, shape index: {}]   ;;  %s736_s1 = inlined_call_operand.vmem [shape: bf16[32,32], index: 1, kind: input, shape index: {}]   ;;  %s737_s2 = inlined_call_operand.vmem [shape: f32[1,32], index: 2, kind: input, shape index: {}]   ;;  %s738_s3 = inlined_call_operand.hbm [shape: bf16[32,32], index: 3, kind: input, shape index: {}]   ;;  %s739_s4 = inlined_call_operand.vmem [shape: f32[1,32], index: 4, kind: input, shape index: {}]   ;;  %s740_s5 = inlined_call_operand.hbm [shape: bf16[4,32,128], index: 5, kind: input, shape index: {}]   ;;  %s741_s6 = inlined_call_operand.vmem [shape: f32[1,128], index: 6, kind: input, shape index: {}]   ;;  %s742_s7 = inlined_call_operand.vmem [shape: f32[2,128], index: 7, kind: output, shape index: {}]  }
   0x1   :  { %13 = vsyncpa [#allocation6], 0  ;;  %s613_s24 = smov [#allocation3]   ;;  %s565_s28 = scalar_lea.hbm %s738_s3, 256 }
   0x2   :  { %s25_s25 = sshll.u32 %s613_s24, 4  ;;  %p566_p0 = scmp.ne.s32.totalorder %s738_s3, %s565_s28  ;;  %s26_s25 = int_to_ptr.vmem [resolvable:$true] %s25_s25 }
   0x3   :  { %p569_p1 = scmp.lt.u32.totalorder %s565_s28, %s738_s3 }
   0x5   :  { %p571_p2 = pnand %p569_p1, %p566_p0 }
   0x7   :  { %574 = shalt.err (!%p571_p2)
}
   0x8   :  { %s575_s10 = scalar_lea.vmem %s26_s25, 256  ;;  %p580_p4 = scmp.lt.s32.totalorder %s26_s25, %s26_s25 }
   0x9   :  { %p576_p3 = scmp.ne.s32.totalorder %s26_s25, %s575_s10  ;;  %p581_p5 = scmp.lt.s32.totalorder %s575_s10, %s575_s10 }
   0xb   :  { %p582_p6 = por %p581_p5, %p580_p4 }
   0xd   :  { %p583_p7 = pnand %p582_p6, %p576_p3 }
   0xf   :  { %586 = shalt.err (!%p583_p7)
}
  0x10   :  { %s614_s11 = smov 64   ;;  %s615_s12 = smov 4  }
  0x11   :  { %31 = dma.hbm_to_vmem [thread:$0]  %s738_s3, 256, %s26_s25, [#allocation4], %s614_s11, %s614_s11, %s615_s12  }
  0x12   :  { %s616_s15 = smov [#allocation5]   ;;  %s587_s19 = scalar_lea.hbm %s740_s5, 1024 }
  0x13   :  { %s39_s16 = sshll.u32 %s616_s15, 4  ;;  %p588_p8 = scmp.ne.s32.totalorder %s740_s5, %s587_s19  ;;  %s40_s16 = int_to_ptr.vmem [resolvable:$true] %s39_s16 }
  0x14   :  { %p591_p9 = scmp.lt.u32.totalorder %s587_s19, %s740_s5 }
  0x16   :  { %p593_p10 = pnand %p591_p9, %p588_p8 }
  0x18   :  { %596 = shalt.err (!%p593_p10)
}
  0x19   :  { %s597_s24 = scalar_lea.vmem %s40_s16, 1024  ;;  %p602_p12 = scmp.lt.s32.totalorder %s40_s16, %s40_s16 }
  0x1a   :  { %p598_p11 = scmp.ne.s32.totalorder %s40_s16, %s597_s24  ;;  %p603_p13 = scmp.lt.s32.totalorder %s597_s24, %s597_s24 }
  0x1c   :  { %p604_p0 = por %p603_p13, %p602_p12 }
  0x1e   :  { %p605_p1 = pnand %p604_p0, %p598_p11 }
  0x20   :  { %608 = shalt.err (!%p605_p1)
}
  0x21   :  { %45 = dma.hbm_to_vmem [thread:$0]  %s740_s5, 1024, %s40_s16, [#allocation6], %s614_s11, %s614_s11, %s615_s12  }
  0x22   :  { %609 = dma.done.wait [#allocation4], 256  }
  0x23   :  { %610 = vsyncadd [#allocation4], 4294967040 }
  0x24   :  { %611 = dma.done.wait [#allocation6], 1024  }
  0x25   :  { %612 = vsyncadd [#allocation6], 4294966272  ;;  %v617_v0 = vmov 0.0   ;;  %vm618_vm0 = vmmov 0   ;;  %v553_v1 = vld [vmem:[%s736_s1] sm:$0xff]   ;;  %v554_v2 = vld [vmem:[%s736_s1 + $0x8] sm:$0xff]  }
  0x26   :  { %499 = vmatprep.subr.bf16.mxu0 %v617_v0  ;;  %503 = vmatprep.mubr.msk.bf16.mxu0 %vm618_vm0, %v617_v0  ;;  %vm79_vm1 = vcmask 261120   ;;  %v55_v3 = vld [vmem:[%s735_s0] sm:$0xf]  ;;  %v555_v4 = vld [vmem:[#allocation3] sm:$0xff]   ;;  %v558_v15 = vld [vmem:[#allocation5] sm:$0xff]  }
  0x27   :  { %507 = vmatprep.subr.bf16.mxu1 %v617_v0  ;;  %511 = vmatprep.mubr.msk.bf16.mxu1 %vm618_vm0, %v617_v0  ;;  %v556_v5 = vld [vmem:[#allocation3 + $0x8] sm:$0xff]   ;;  %v557_v14 = vld [vmem:[#allocation5 + $0x10] sm:$0xff]   ;;  %v560_v17 = vld [vmem:[#allocation5 + $0x8] sm:$0xff]  }
  0x28   :  { %500 = vmatpush3.bf16.msra.mxu0 %v553_v1  ;;  %508 = vmatpush3.bf16.msra.mxu1 %v555_v4  ;;  %v460_v6 = vld [vmem:[%s737_s2] ss:$0 sm:$0xff]  ;;  %v561_v25 = vld [vmem:[#allocation5 + $0x20] sm:$0xff]   ;;  %v562_v26 = vld [vmem:[#allocation5 + $0x30] sm:$0xff]  }
  0x29   :  { %501 = vmatprep.subr.bf16.mxu0 %v617_v0  ;;  %509 = vmatprep.subr.bf16.mxu1 %v617_v0  ;;  %v559_v16 = vld [vmem:[#allocation5 + $0x18] sm:$0xff]   ;;  %v563_v31 = vld [vmem:[#allocation5 + $0x28] sm:$0xff]  }
  0x2a   :  { %v464_v18 = vld [vmem:[%s739_s4] ss:$0 sm:$0xff] }
  0x2b   :  { %v564_v32 = vld [vmem:[#allocation5 + $0x38] sm:$0xff]  }
  0x2c   :  { %502 = vmatpush3.bf16.msra.mxu0 %v554_v2  ;;  %510 = vmatpush3.bf16.msra.mxu1 %v556_v5  ;;  %v480_v51 = vld [vmem:[%s741_s6] ss:$0 sm:$0xff] }
  0x2d   :  { %515 = vmatprep.subr.bf16.mxu0 %v617_v0  ;;  %523 = vmatprep.subr.bf16.mxu1 %v617_v0 }
  0x2f   :  { %504 = vmatmul.mubr.msk.bf16.vlgmr.msra.gmra.mrb[0].mxu0 %vm79_vm1, %v55_v3 }
  0x30   :  { %519 = vmatprep.mubr.msk.bf16.mxu0 %vm618_vm0, %v617_v0  ;;  %516 = vmatpush3.bf16.msra.mxu0 %v557_v14 }
  0x31   :  { %517 = vmatprep.subr.bf16.mxu0 %v617_v0 }
  0x34   :  { %518 = vmatpush3.bf16.msra.mxu0 %v559_v16 }
  0x35   :  { %531 = vmatprep.subr.bf16.mxu0 %v617_v0 }
 0x102   :  { %v117_v7 = vpop.f32.mrb[0].mxu0 }
 0x103   :  { %v118_v8 = vadd.f32 %v460_v6, %v117_v7  ;;  %v505_v9 = vpop.f32.mrb[1].mxu0 }
 0x104   :  { %v120_v10 = vpop.f32.mrb[2].mxu0 }
 0x105   :  { %v123_v11 = vmax.f32 %v118_v8, 0.0  ;;  %v506_v12 = vpop.f32.mrb[3].mxu0 }
 0x107   :  { %v124_v13 = vpack.c.bf16 %v123_v11, %v123_v11 }
 0x109   :  { %512 = vmatmul.mubr.msk.bf16.vlgmr.msra.gmra.mrb[0].mxu1 %vm79_vm1, %v124_v13 }
 0x10a   :  { %527 = vmatprep.mubr.msk.bf16.mxu1 %vm618_vm0, %v617_v0  ;;  %524 = vmatpush3.bf16.msra.mxu1 %v558_v15 }
 0x10b   :  { %525 = vmatprep.subr.bf16.mxu1 %v617_v0 }
 0x10e   :  { %526 = vmatpush3.bf16.msra.mxu1 %v560_v17 }
 0x10f   :  { %539 = vmatprep.subr.bf16.mxu1 %v617_v0 }
 0x1dc   :  { %v185_v19 = vpop.f32.mrb[0].mxu1 }
 0x1dd   :  { %v186_v20 = vadd.f32 %v464_v18, %v185_v19  ;;  %v513_v21 = vpop.f32.mrb[1].mxu1 }
 0x1de   :  { %v188_v22 = vpop.f32.mrb[2].mxu1 }
 0x1df   :  { %v191_v23 = vmax.f32 %v186_v20, 0.0  ;;  %v514_v24 = vpop.f32.mrb[3].mxu1 }
 0x1e1   :  { %192 = vst.msk [vmem:[#allocation2] sm:$0xff] %vm79_vm1, %v191_v23 }
 0x1e8   :  { %v200_v27 = vld [vmem:[#allocation2 + $0x1] ss:$4 sm:$0x3]  ;;  %v193_v28 = vld [vmem:[#allocation2] ss:$4 sm:$0x3] }
 0x1e9   :  { %v201_v29 = vpack.c.bf16 %v200_v27, %v200_v27  ;;  %v194_v30 = vpack.c.bf16 %v193_v28, %v193_v28  ;;  %v318_v33 = vld [vmem:[#allocation2 + $0x2] ss:$4 sm:$0x3]  ;;  %v382_v34 = vld [vmem:[#allocation2 + $0x3] ss:$4 sm:$0x3] }
 0x1ea   :  { %v319_v35 = vpack.c.bf16 %v318_v33, %v318_v33  ;;  %v383_v36 = vpack.c.bf16 %v382_v34, %v382_v34 }
 0x1eb   :  { %520 = vmatmul.mubr.msk.bf16.vlgmr.msra.gmra.mrb[4].mxu0 %vm79_vm1, %v201_v29  ;;  %528 = vmatmul.mubr.msk.bf16.vlgmr.msra.gmra.mrb[4].mxu1 %vm79_vm1, %v194_v30 }
 0x1ec   :  { %532 = vmatpush3.bf16.msra.mxu0 %v561_v25  ;;  %540 = vmatpush3.bf16.msra.mxu1 %v562_v26 }
 0x1ed   :  { %533 = vmatprep.subr.bf16.mxu0 %v617_v0  ;;  %541 = vmatprep.subr.bf16.mxu1 %v617_v0 }
 0x1ee   :  { %535 = vmatprep.mubr.msk.bf16.mxu0 %vm618_vm0, %v617_v0  ;;  %543 = vmatprep.mubr.msk.bf16.mxu1 %vm618_vm0, %v617_v0 }
 0x1f0   :  { %534 = vmatpush3.bf16.msra.mxu0 %v563_v31  ;;  %542 = vmatpush3.bf16.msra.mxu1 %v564_v32 }
 0x1f3   :  { %536 = vmatmul.mubr.msk.bf16.vlgmr.msra.gmra.mrb[8].mxu0 %vm79_vm1, %v319_v35  ;;  %544 = vmatmul.mubr.msk.bf16.vlgmr.msra.gmra.mrb[8].mxu1 %vm79_vm1, %v383_v36 }
 0x2be   :  { %v256_v37 = vpop.f32.mrb[4].mxu0  ;;  %v311_v38 = vpop.f32.mrb[4].mxu1 }
 0x2bf   :  { %v312_v39 = vadd.f32 %v311_v38, %v256_v37  ;;  %v521_v40 = vpop.f32.mrb[5].mxu0  ;;  %v529_v41 = vpop.f32.mrb[5].mxu1 }
 0x2c0   :  { %v259_v42 = vpop.f32.mrb[6].mxu0  ;;  %v314_v43 = vpop.f32.mrb[6].mxu1 }
 0x2c1   :  { %v522_v44 = vpop.f32.mrb[7].mxu0  ;;  %v530_v45 = vpop.f32.mrb[7].mxu1 }
 0x2c6   :  { %v374_v46 = vpop.f32.mrb[8].mxu0  ;;  %v438_v47 = vpop.f32.mrb[8].mxu1 }
 0x2c7   :  { %v380_v48 = vadd.f32 %v374_v46, %v312_v39  ;;  %v537_v49 = vpop.f32.mrb[9].mxu0  ;;  %v545_v50 = vpop.f32.mrb[9].mxu1 }
 0x2c8   :  { %v377_v52 = vpop.f32.mrb[10].mxu0  ;;  %v441_v53 = vpop.f32.mrb[10].mxu1 }
 0x2c9   :  { %v444_v54 = vadd.f32 %v438_v47, %v380_v48  ;;  %v538_v55 = vpop.f32.mrb[11].mxu0  ;;  %v546_v56 = vpop.f32.mrb[11].mxu1 }
 0x2cb   :  { %v452_v57 = vadd.f32 %v480_v51, %v444_v54 }
 0x2cd   :  { %453 = vst [vmem:[%s742_s7] sm:$0x3] %v452_v57 }
 0x2ce   :  { %458 = vsyncpa [#allocation4], 1 }
 0x2cf   :  { %459 = vsyncpa [#allocation6], 1 }

</bundles_post_ra>
